<compile_context>
chip_gen: v7x
topology: tpu7x:2x2x1
jax: 0.10.0
libtpu: 0.0.40
codegen_flags: <defaults>
</compile_context>

<pallas_src>
import jax
import jax.numpy as jnp
from jax.experimental import pallas as pl
from jax.experimental.pallas import tpu as pltpu


# ---------------------------------------------------------------------------
# Pallas kernels
# ---------------------------------------------------------------------------

def _make_outconv_kernel(b_blk):
    """Build the 1x1-conv tile kernel for a given batch-block size."""
    if b_blk == 1:
        def kernel(x_ref, w_ref, b_ref, o_ref):
            # x_ref: (Cin, T), w_ref: (Cout, Cin), b_ref: (Cout, 1), o_ref: (Cout, T)
            y = jnp.dot(w_ref[...], x_ref[...],
                        preferred_element_type=jnp.float32)
            o_ref[...] = (y + b_ref[...]).astype(o_ref.dtype)
        return kernel

    def kernel(x_ref, w_ref, b_ref, o_ref):
        # x_ref: (B_blk, Cin, T), o_ref: (B_blk, Cout, T)
        w = w_ref[...]
        bias = b_ref[...]
        for i in range(b_blk):  # small static unroll (b_blk <= 16)
            y = jnp.dot(w, x_ref[i], preferred_element_type=jnp.float32)
            o_ref[i] = (y + bias).astype(o_ref.dtype)
    return kernel


# ---------------------------------------------------------------------------
# Tiling heuristics
# ---------------------------------------------------------------------------

def _vmem_capacity_bytes():
    """Physical VMEM per core; conservative (v7x-sized) fallback."""
    try:
        info_fn = getattr(pltpu, "get_tpu_info", None)
        if info_fn is not None:
            return int(info_fn().vmem_capacity_bytes)
    except Exception:
        pass
    return 64 * 1024 * 1024


def _round_up(x, m):
    return ((x + m - 1) // m) * m


def _pick_spatial_tile(hw, cin, in_block_budget, max_tile=16384):
    """Spatial tile: power-of-two multiple of 128, sized from the per-block
    byte budget, shrunk until padding waste stays under ~6% of H*W.
    Returns (tile, hw_padded) with tile | hw_padded."""
    hw128 = _round_up(hw, 128)
    bytes_per_lane = max(cin, 1) * 4
    budget_tile = max(128, (in_block_budget // bytes_per_lane) // 128 * 128)

    tile = 128
    while tile * 2 <= min(max_tile, budget_tile):
        tile *= 2
    while tile > 128:
        extra = _round_up(hw128, tile) - hw128
        if extra * 16 <= hw128:          # <= ~6% extra DMA from padding
            break
        tile //= 2
    return tile, _round_up(hw128, tile)


def _pick_batch_block(n, cin, tile, hw_tiles, in_block_budget):
    """Pack batch elements per grid step for small H*W, targeting >= ~2 MiB
    per step, but never collapsing below 2 grid steps (v7x dual TensorCores)."""
    bytes_per_batch = max(cin, 1) * tile * 4
    target = min(in_block_budget, 2 * 1024 * 1024)
    want = max(1, min(16, target // bytes_per_batch))
    total_steps = n * hw_tiles
    best = 1
    for d in range(1, n + 1):
        if n % d != 0 or d > want:
            continue
        steps = (n // d) * hw_tiles
        if total_steps >= 2 and steps < 2:
            continue
        best = d
    return best


# ---------------------------------------------------------------------------
# Wrapper
# ---------------------------------------------------------------------------

def out_conv(x_nchw, w, b):
    """nn.Conv2d(in_channels, out_channels, kernel_size=1) forward.

    x_nchw: (N, Cin, H, W) float32
    w:      (Cout, Cin, 1, 1) or (Cout, Cin) float32
    b:      (Cout,) float32
    returns (N, Cout, H, W) float32
    """
    n, cin, h, wd = x_nchw.shape
    w2d = w.reshape(w.shape[0], cin).astype(x_nchw.dtype)
    cout = w2d.shape[0]
    b2d = b.reshape(cout, 1).astype(x_nchw.dtype)
    hw = h * wd

    vmem = _vmem_capacity_bytes()
    # Per-step input-block budget (pipeliner double-buffers it):
    # ~8 MiB on 128 MiB-VMEM chips (v5e/v6e), ~4 MiB on 64 MiB chips (v7x).
    in_block_budget = (8 if vmem >= 96 * 1024 * 1024 else 4) * 1024 * 1024

    tile, hw_pad = _pick_spatial_tile(hw, cin, in_block_budget)
    hw_tiles = hw_pad // tile
    b_blk = _pick_batch_block(n, cin, tile, hw_tiles, in_block_budget)
    grid = (n // b_blk, hw_tiles)

    x_flat = x_nchw.reshape(n, cin, hw)          # free reshape, stays NCHW
    if hw_pad != hw:
        # Pad the flattened spatial axis so every tile is full; padded lanes
        # compute bias-only garbage that is sliced off below.
        x_flat = jnp.pad(x_flat, ((0, 0), (0, 0), (0, hw_pad - hw)))

    if b_blk == 1:
        # Squeeze the size-1 batch dim out of the kernel refs: plain
        # lane-dense (Cout, TILE) store, no [None] expand.
        x_spec = pl.BlockSpec((None, cin, tile), lambda i, j: (i, 0, j))
        o_spec = pl.BlockSpec((None, cout, tile), lambda i, j: (i, 0, j))
    else:
        x_spec = pl.BlockSpec((b_blk, cin, tile), lambda i, j: (i, 0, j))
        o_spec = pl.BlockSpec((b_blk, cout, tile), lambda i, j: (i, 0, j))

    cost = pl.CostEstimate(
        flops=int(2 * n * cout * cin * hw_pad),
        transcendentals=0,
        bytes_accessed=int(4 * (n * hw_pad * (cin + cout) + cout * cin + cout)),
    )

    # Scoped VMEM: leave headroom for 2-deep pipelining on 64 MiB (v7x) as
    # well as 128 MiB (v5e/v6e) chips.
    vmem_limit = int(min(vmem * 2 // 5, 48 * 1024 * 1024))

    out_flat = pl.pallas_call(
        _make_outconv_kernel(b_blk),
        out_shape=jax.ShapeDtypeStruct((n, cout, hw_pad), x_nchw.dtype),
        grid=grid,
        in_specs=[
            x_spec,
            pl.BlockSpec((cout, cin), lambda i, j: (0, 0)),   # VMEM-resident
            pl.BlockSpec((cout, 1), lambda i, j: (0, 0)),     # VMEM-resident
        ],
        out_specs=o_spec,
        compiler_params=pltpu.CompilerParams(
            dimension_semantics=("parallel", "parallel"),
            vmem_limit_bytes=vmem_limit,
        ),
        cost_estimate=cost,
    )(x_flat, w2d, b2d)

    if hw_pad != hw:
        out_flat = out_flat[:, :, :hw]
    return out_flat.reshape(n, cout, h, wd)


# ---------------------------------------------------------------------------
# Demo / correctness check
# ---------------------------------------------------------------------------

if __name__ == "__main__":
    key = jax.random.PRNGKey(0)
    kx, kw, kb = jax.random.split(key, 3)

    # Shapes matching the UNet's OutConv usage: 64 input channels -> 1 class.
    n, cin, cout, h, wd = 2, 64, 1, 16, 16
    x = jax.random.normal(kx, (n, cin, h, wd), jnp.float32)
    w = jax.random.normal(kw, (cout, cin, 1, 1), jnp.float32) * (1.0 / cin) ** 0.5
    b = 0.01 * jax.random.normal(kb, (cout,), jnp.float32)

    fwd = jax.jit(out_conv)
    y = fwd(x, w, b)
    jax.block_until_ready(y)

    assert y.shape == (n, cout, h, wd)
    ref = jnp.einsum("nchw,oc->nohw", x, w.reshape(cout, cin)) + b.reshape(1, cout, 1, 1)
    assert bool(jnp.all(jnp.isfinite(y)))
    assert bool(jnp.allclose(y, ref, atol=1e-4, rtol=1e-4))
    print("KERNEL_OK")
</pallas_src>

<mosaic_0001>
module attributes {stable_mosaic.version = 11 : i64} {
  func.func @kernel(%arg0: i32, %arg1: i32, %arg2: memref<1x64x256xf32, #tpu.memory_space<vmem>>, %arg3: memref<1x64xf32, #tpu.memory_space<vmem>>, %arg4: memref<1x1xf32, #tpu.memory_space<vmem>>, %arg5: memref<1x1x256xf32, #tpu.memory_space<vmem>>) attributes {dimension_semantics = [#tpu.dimension_semantics<parallel>, #tpu.dimension_semantics<parallel>], iteration_bounds = array<i64: 2, 1>, scalar_prefetch = 0 : i64, scratch_operands = 0 : i64, tpu.core_type = #tpu.core_type<tc>, window_params = [{transform_indices = @transform_0, window_bounds = array<i64: 1, 64, 256>}, {pipeline_mode = #tpu.pipeline_mode<synchronous>, transform_indices = @transform_1, window_bounds = array<i64: 1, 64>}, {pipeline_mode = #tpu.pipeline_mode<synchronous>, transform_indices = @transform_2, window_bounds = array<i64: 1, 1>}, {transform_indices = @transform_3, window_bounds = array<i64: 1, 1, 256>}]} {
    %c0 = arith.constant 0 : index
    %c0_0 = arith.constant 0 : index
    %0 = vector.load %arg3[%c0, %c0_0] : memref<1x64xf32, #tpu.memory_space<vmem>>, vector<1x64xf32>
    %c0_1 = arith.constant 0 : index
    %c0_2 = arith.constant 0 : index
    %c0_3 = arith.constant 0 : index
    %1 = vector.load %arg2[%c0_1, %c0_2, %c0_3] : memref<1x64x256xf32, #tpu.memory_space<vmem>>, vector<1x64x256xf32>
    %2 = vector.shape_cast %1 : vector<1x64x256xf32> to vector<64x256xf32>
    %cst = arith.constant dense<0.000000e+00> : vector<1x256xf32>
    %3 = tpu.matmul %0, %2, %cst {dimension_numbers = #tpu.dot_dimension_numbers<[1], [0], [0], [1], [0, 0, 1, 1], [], []>} : vector<1x64xf32>, vector<64x256xf32>, vector<1x256xf32> -> vector<1x256xf32>
    %c0_4 = arith.constant 0 : index
    %c0_5 = arith.constant 0 : index
    %4 = vector.load %arg4[%c0_4, %c0_5] : memref<1x1xf32, #tpu.memory_space<vmem>>, vector<1x1xf32>
    %5 = vector.broadcast %4 : vector<1x1xf32> to vector<1x256xf32>
    %6 = arith.addf %3, %5 : vector<1x256xf32>
    %c0_6 = arith.constant 0 : index
    %c0_7 = arith.constant 0 : index
    %c0_8 = arith.constant 0 : index
    %7 = vector.load %arg5[%c0_6, %c0_7, %c0_8] : memref<1x1x256xf32, #tpu.memory_space<vmem>>, vector<1x1x256xf32>
    %8 = vector.shape_cast %7 : vector<1x1x256xf32> to vector<1x256xf32>
    %9 = vector.shape_cast %6 : vector<1x256xf32> to vector<1x1x256xf32>
    tpu.vector_store %arg5[%c0_6, %c0_7, %c0_8], %9 {strides = array<i32>} : memref<1x1x256xf32, #tpu.memory_space<vmem>>, vector<1x1x256xf32>,
    return
  }
  func.func @transform_0(%arg0: i32, %arg1: i32) -> (i32, i32, i32) {
    %c0_i32 = arith.constant 0 : i32
    %c0_i32_0 = arith.constant 0 : i32
    return %arg0, %c0_i32, %arg1 : i32, i32, i32
  }
  func.func @transform_1(%arg0: i32, %arg1: i32) -> (i32, i32) {
    %c0_i32 = arith.constant 0 : i32
    %c0_i32_0 = arith.constant 0 : i32
    %c0_i32_1 = arith.constant 0 : i32
    return %c0_i32, %c0_i32_0 : i32, i32
  }
  func.func @transform_2(%arg0: i32, %arg1: i32) -> (i32, i32) {
    %c0_i32 = arith.constant 0 : i32
    %c0_i32_0 = arith.constant 0 : i32
    %c0_i32_1 = arith.constant 0 : i32
    return %c0_i32, %c0_i32_0 : i32, i32
  }
  func.func @transform_3(%arg0: i32, %arg1: i32) -> (i32, i32, i32) {
    %c0_i32 = arith.constant 0 : i32
    %c0_i32_0 = arith.constant 0 : i32
    return %arg0, %c0_i32, %arg1 : i32, i32, i32
  }
}

</mosaic_0001>

<bundles_post_ra>
// kernel: out_conv.1
= control target key start
LH: loop header
LB: loop body
LE: loop exit
PB: predicated region body
PF: predicated region fallthrough
CT: control target
= control target key end

     0   :  { %s522_s14 = smov 0   ;;  %s524_s15 = smov 0   ;;  %s562_s0 = inlined_call_operand.vmem [shape: f32[2,64,256], index: 0, kind: input, shape index: {}]   ;;  %s563_s1 = inlined_call_operand.vmem [shape: f32[1,64], index: 1, kind: input, shape index: {}]   ;;  %s564_s2 = inlined_call_operand.<no memory space> [shape: f32[1,1], index: 2, kind: input, shape index: {}]   ;;  %s565_s3 = inlined_call_operand.vmem [shape: f32[2,1,256], index: 3, kind: output, shape index: {}]  }
   0x1   :  { %v8_v0 = vstv %s564_s2  ;;  %s526_s16 = smov 0  }
   0x2   :  { %9 = vst [vmem:[#allocation2] sm:$0x1] %v8_v0 }
   0x3 LB: > { %s27_s2 = sadd.s32 1, %s490_s15  ;;  %p420_p0 = scmp.ge.s32.totalorder %s494_s16, 1  ;;  %s494_s16 = sphi %s526_s16, %s15_s16   ;;  %s490_s15 = sphi %s524_s15, %s567_s15   ;;  %s486_s14 = sphi %s522_s14, %s566_s14  }
   0x4   : > { %p29_p1 = scmp.ge.s32.totalorder %s27_s2, 2  ;;  %p160_p2 = scmp.lt.s32.totalorder %s494_s16, 3 }
   0x6   : > { %s569_s2 = smov (%p29_p1, %s27_s2), 0  ;;  %p161_p3 = pnand %p420_p0, %p160_p2 }
   0x7   : > { %p192_p4 = scmp.lt.s32.totalorder (!%p161_p3), %s486_s14, 1  ;;  %v496_v1 = vmov (!%p161_p3), 0.0   ;;  %v497_v2 = vmov (!%p161_p3), 0   ;;  %v210_v28 = vld [vmem:[%s563_s1] sm:$0x1] (!%p161_p3)  ;;  %vm237_vm0 = vcmask (!%p161_p3), 523264   ;;  %v233_v29 = vlaneseq (!%p161_p3) }
   0x8   : > { %164 = sbr.rel (%p161_p3) target bundleno = 259 (0x103), region = 32  ;;  %305 = vmatprep.mubr.f32.mxu0 (!%p161_p3), %v496_v1  ;;  %471 = vset.pattern.permute.xlu0 (!%p161_p3), %v497_v2  ;;  %v498_v33 = vmov (!%p161_p3), 1966171168  }
   0x9   : > { %v227_v3 = vld [vmem:[#allocation2] sm:$0x1] (!%p161_p3)  ;;  %v234_v30 = vshrl.u32 (!%p161_p3), %v233_v29, 7  ;;  %v316_v34 = vunpack.c.l.s4 (!%p161_p3), %v498_v33  ;;  %vm332_vm1 = vcmp.lt.s32.totalorder (!%p161_p3), %v233_v29, 256 }
   0xa   : > { %230 = vperm.xlu0 (!%p161_p3), %471, %v227_v3  }
   0xb   : > { %v235_v31 = vsub.s32 (!%p161_p3), 0, %v234_v30  ;;  %v317_v36 = vunpack.c.0.s8 (!%p161_p3), %v316_v34 }
   0xd   : > { %v320_v41 = vsub.s32 (!%p161_p3), %v317_v36, %v234_v30 }
   0xf   : > { %s571_s14 = smov (!%p192_p4, %s486_s14), 1 }
  0x10   : > { %s427_s17 = sshll.u32 %s571_s14, 7  ;;  %s423_s23 = sshll.u32 %s571_s14, 1 }
  0x11   : > { %s199_s20 = scalar_lea.vmem %s562_s0, %s427_s17  ;;  %s208_s26 = scalar_lea.vmem %s565_s3, %s423_s23 }
  0x12   : > { %v212_v4 = vld [vmem:[%s199_s20 + $0x8] sm:$0xff]  ;;  %v214_v5 = vld [vmem:[%s199_s20 + $0x18] sm:$0xff]  ;;  %v211_v6 = vld [vmem:[%s199_s20] sm:$0xff] }
  0x13   : > { %v428_v7 = vpack.c.bf16 %v214_v5, %v212_v4  ;;  %v213_v8 = vld [vmem:[%s199_s20 + $0x10] sm:$0xff]  ;;  %v216_v9 = vld [vmem:[%s199_s20 + $0x28] sm:$0xff]  ;;  %v218_v10 = vld [vmem:[%s199_s20 + $0x38] sm:$0xff] }
  0x14   : > { %v430_v11 = vpack.c.bf16 %v213_v8, %v211_v6  ;;  %v432_v12 = vpack.c.bf16 %v218_v10, %v216_v9  ;;  %v215_v13 = vld [vmem:[%s199_s20 + $0x20] sm:$0xff]  ;;  %v217_v14 = vld [vmem:[%s199_s20 + $0x30] sm:$0xff]  ;;  %v220_v15 = vld [vmem:[%s199_s20 + $0x48] sm:$0xff] }
  0x15   : > { %429 = vmatprep.subr.bf16.mxu0 %v428_v7  ;;  %v222_v16 = vld [vmem:[%s199_s20 + $0x58] sm:$0xff]  ;;  %v434_v17 = vpack.c.bf16 %v217_v14, %v215_v13  ;;  %v219_v19 = vld [vmem:[%s199_s20 + $0x40] sm:$0xff]  ;;  %v221_v20 = vld [vmem:[%s199_s20 + $0x50] sm:$0xff] }
  0x16   : > { %431 = vmatpush1.bf16.msra.mxu0 %v430_v11  ;;  %v436_v18 = vpack.c.bf16 %v222_v16, %v220_v15  ;;  %v224_v21 = vld [vmem:[%s199_s20 + $0x68] sm:$0xff]  ;;  %v226_v22 = vld [vmem:[%s199_s20 + $0x78] sm:$0xff]  ;;  %v438_v23 = vpack.c.bf16 %v221_v20, %v219_v19  ;;  %v223_v25 = vld [vmem:[%s199_s20 + $0x60] sm:$0xff] }
  0x17   : > { %433 = vmatprep.subr.bf16.mxu0 %v432_v12  ;;  %v440_v24 = vpack.c.bf16 %v226_v22, %v224_v21  ;;  %v225_v26 = vld [vmem:[%s199_s20 + $0x70] sm:$0xff] }
  0x18   : > { %v442_v27 = vpack.c.bf16 %v225_v26, %v223_v25 }
  0x1a   : > { %435 = vmatpush1.bf16.msra.mxu0 %v434_v17 }
  0x1b   : > { %437 = vmatprep.subr.bf16.mxu0 %v436_v18 }
  0x1e   : > { %439 = vmatpush1.bf16.msra.mxu0 %v438_v23 }
  0x1f   : > { %441 = vmatprep.subr.bf16.mxu0 %v440_v24 }
  0x22   : > { %443 = vmatpush1.bf16.msra.mxu0 %v442_v27 }
  0x25   : > { %424 = vmatmul.mubr.msk.f32.vlgmr.msra.gmra.mrb[0].mxu0 %vm237_vm0, %v210_v28 }
  0x89   : > { %v231_v32 = vpop.permute.xlu0 %230 }
  0x8a   : > { %v236_v35 = vrot.slane %v231_v32, %v235_v31 }
  0xf8   : > { %v307_v37 = vpop.f32.mrb[0].mxu0 }
  0xf9   : > { %v308_v38 = vadd.f32 %v307_v37, %v236_v35  ;;  %v309_v39 = vpop.f32.mrb[1].mxu0 }
  0xfa   : > { %v310_v40 = vadd.f32 %v309_v39, %v236_v35 }
  0xfc   : > { %v314_v42 = vcombine.low %v308_v38, %v310_v40 }
  0xfe   : > { %v321_v43 = vrot.slane %v314_v42, %v320_v41 }
 0x100   : > { %v328_v44 = vrot.slane %v321_v43, %v320_v41 }
 0x102   : > { %334 = vst.msk [vmem:[%s208_s26] sm:$0x3] %vm332_vm1, %v328_v44 }
 0x103 PF: > { %s15_s16 = sadd.s32 1, %s494_s16   ;;  %s566_s14 = smov %s490_s15 }
 0x104   : > { %p12_p5 = scmp.ge.s32.totalorder %s15_s16, 4   ;;  %s567_s15 = smov %s569_s2 }
 0x106   :  { %14 = sbr.rel (!%p12_p5) target bundleno = 3 (0x3), region = 62 }

</bundles_post_ra>
